<compile_context>
chip_gen: v6e
topology: v6e:2x2x1
jax: 0.10.0
libtpu: 0.0.40
codegen_flags: <defaults>
</compile_context>

<pallas_src>
import functools

import jax
import jax.numpy as jnp
from jax.experimental import pallas as pl
from jax.experimental.pallas import tpu as pltpu

SH_C0 = 0.28209479177387814  # rgb_to_sh constant (gsplat convention)
AUX_W = 8                    # packed aux lanes: xyz(3) | scale_extend(3) | decay(1) | pad(1)


# ---------------------------------------------------------------------------
# Pallas kernel: one grid step handles a (tile_n, ...) slab of anchors.
# ---------------------------------------------------------------------------
def scaffold_kernel(
    # per-anchor inputs (tiled over N)
    feat_ref,      # (tn, F)      anchor features (stream dtype)
    aux_ref,       # (tn, AUX_W)  [anchor_xyz | scale_extend | opacity_decay | pad] (f32)
    # broadcast inputs (full)
    cam_ref,       # (1, 3)       camera translation c2w_t      (f32)
    # fused MLP params
    w1f_ref,       # (F, 4H)      [ws1 | wq1 | wo1 | wc1_feat]  (stream dtype)
    w1v_ref,       # (3, 4H)      [ 0  |  0  |  0  | wc1_view]  (stream dtype)
    b1_ref,        # (1, 4H)      fused first-layer bias        (f32)
    w2_ref,        # (4H, 11K)    block_diag(ws2, wq2, wo2, wc2)(stream dtype)
    b2_ref,        # (1, 11K)     fused second-layer bias       (f32)
    # fused output (tiled over N): scales(3K) | quats(4K) | opac(K) | sh0(3K)
    out_ref,       # (tn, 11K)    f32
    *, K,
):
    feat = feat_ref[...]                                   # (tn, F)
    aux = aux_ref[...]                                     # (tn, AUX_W)
    axyz = aux[:, 0:3]
    sext = aux[:, 3:6]
    odec = aux[:, 6:7]
    cam = cam_ref[...]                                     # (1, 3)

    # ob_view = normalize(c2w_t - anchor_xyz)
    ob = cam - axyz
    ob = ob * jax.lax.rsqrt(jnp.sum(ob * ob, axis=-1, keepdims=True))

    # ---- fused first layer: one lane-dense (tn,F)@(F,4H) matmul; ob only
    #      contributes to the colors block (zero-padded w1v). ------------------
    h = (jnp.dot(feat, w1f_ref[...], preferred_element_type=jnp.float32)
         + jnp.dot(ob.astype(w1v_ref.dtype), w1v_ref[...],
                   preferred_element_type=jnp.float32)
         + b1_ref[...])
    h = jnp.maximum(h, 0.0)                                # ReLU, f32

    # ---- fused second layer: block-diagonal (4H, 11K) weight -> one matmul ---
    raw = (jnp.dot(h.astype(w2_ref.dtype), w2_ref[...],
                   preferred_element_type=jnp.float32)
           + b2_ref[...])                                  # (tn, 11K)

    K3, K4 = 3 * K, 4 * K
    o_lo = K3 + K4          # start of opacity lanes
    c_lo = o_lo + K         # start of color lanes

    # scales: sigmoid * scale_extend (K-tiled along lanes, in VMEM)
    scales = jax.nn.sigmoid(raw[:, :K3]) * jnp.tile(sext, (1, K))

    # quats: identity activation
    quats = raw[:, K3:o_lo]

    # opacities: 1 - exp(-exp(pre) / max(decay, eps)); reciprocal on the EUP
    eps = jnp.float32(jnp.finfo(jnp.float32).eps)
    inv_od = pl.reciprocal(jnp.maximum(odec, eps), approx=True)   # (tn, 1)
    opac = 1.0 - jnp.exp(-jnp.exp(raw[:, o_lo:c_lo]) * inv_od)

    # colors -> sh0: (sigmoid - 0.5) / SH_C0
    sh0 = (jax.nn.sigmoid(raw[:, c_lo:]) - 0.5) * (1.0 / SH_C0)

    # single fused lane-dense store
    out_ref[...] = jnp.concatenate([scales, quats, opac, sh0], axis=-1)


# ---------------------------------------------------------------------------
# Wrapper
# ---------------------------------------------------------------------------
def _block_diag(blocks):
    rows = sum(b.shape[0] for b in blocks)
    cols = sum(b.shape[1] for b in blocks)
    out = jnp.zeros((rows, cols), jnp.float32)
    r = c = 0
    for b in blocks:
        out = jax.lax.dynamic_update_slice(out, b.astype(jnp.float32), (r, c))
        r += b.shape[0]
        c += b.shape[1]
    return out


def scaffold_forward(aks, cam_t, params, *, tile_n=1024, stream_dtype=jnp.float32):
    feature, anchor_xyz, childs_xyz, scale_extend, opacity_decay = aks
    N, F = feature.shape
    K = childs_xyz.shape[1]
    H = params["scales"][0].shape[1]
    W_out = 11 * K                     # scales(3K) | quats(4K) | opac(K) | sh0(3K)

    # ---- host-side parameter fusion (tiny; lane-dense 4H-wide first layer) ----
    ws1, bs1, ws2, bs2 = params["scales"]
    wq1, bq1, wq2, bq2 = params["quats"]
    wo1, bo1, wo2, bo2 = params["opacities"]
    wc1, bc1, wc2, bc2 = params["colors"]
    wc1f, wc1v = wc1[:F], wc1[F:]                                   # split cat-weight

    w1f = jnp.concatenate([ws1, wq1, wo1, wc1f], axis=1)            # (F, 4H)
    w1v = jnp.concatenate(
        [jnp.zeros((3, 3 * H), jnp.float32), wc1v], axis=1)         # (3, 4H)
    b1 = jnp.concatenate([bs1, bq1, bo1, bc1], axis=1)              # (1, 4H)
    w2 = _block_diag([ws2, wq2, wo2, wc2])                          # (4H, 11K)
    b2 = jnp.concatenate([bs2, bq2, bo2, bc2], axis=1)              # (1, 11K)

    feat_in = feature.astype(stream_dtype)
    w1f = w1f.astype(stream_dtype)
    w1v = w1v.astype(stream_dtype)
    w2 = w2.astype(stream_dtype)

    # ---- pack the narrow per-anchor side inputs into one (N, 8) slab ---------
    aux_in = jnp.concatenate(
        [anchor_xyz.astype(jnp.float32),                            # lanes 0:3
         scale_extend.astype(jnp.float32),                          # lanes 3:6
         opacity_decay.astype(jnp.float32).reshape(N, 1),           # lane  6
         jnp.ones((N, 1), jnp.float32)],                            # lane  7 (pad)
        axis=-1)                                                    # (N, AUX_W)

    # ---- tiling over anchors; pad N up to a multiple of tile_n ---------------
    tile_n = max(8, min((tile_n // 8) * 8, pl.cdiv(N, 8) * 8))
    n_pad = pl.cdiv(N, tile_n) * tile_n
    if n_pad != N:
        pad = n_pad - N
        feat_in = jnp.pad(feat_in, ((0, pad), (0, 0)))
        aux_in = jnp.pad(aux_in, ((0, pad), (0, 0)), constant_values=1.0)

    cam2d = cam_t.reshape(1, 3).astype(jnp.float32)

    grid = (n_pad // tile_n,)
    tiled = lambda d: pl.BlockSpec((tile_n, d), lambda i: (i, 0))
    full = lambda a: pl.BlockSpec(a.shape, lambda i: (0, 0))

    fused = pl.pallas_call(
        functools.partial(scaffold_kernel, K=K),
        grid=grid,
        in_specs=[tiled(F), tiled(AUX_W), full(cam2d),
                  full(w1f), full(w1v), full(b1), full(w2), full(b2)],
        out_specs=tiled(W_out),
        out_shape=jax.ShapeDtypeStruct((n_pad, W_out), jnp.float32),
        compiler_params=pltpu.CompilerParams(
            dimension_semantics=("parallel",)),
    )(feat_in, aux_in, cam2d, w1f, w1v, b1, w2, b2)

    # glue: drop padding, slice the fused slab apart, reshape to Gaussians dict
    fused = fused[:N]
    K3, K4 = 3 * K, 4 * K
    scales = fused[:, :K3]
    quats = fused[:, K3:K3 + K4]
    opac = fused[:, K3 + K4:K3 + K4 + K]
    sh0 = fused[:, K3 + K4 + K:]

    return {
        "means": childs_xyz.reshape(-1, 3),
        "scales": scales.reshape(-1, 3),
        "quats": quats.reshape(-1, 4),
        "opacities": opac.reshape(-1),
        "sh0": sh0.reshape(-1, 3)[:, None, :],             # (N*K, 1, 3)
        "shN": jnp.zeros((N * K, 0, 3), jnp.float32),      # sh_degree = 0
    }


# ---------------------------------------------------------------------------
# Pure-JAX reference (for correctness check)
# ---------------------------------------------------------------------------
def scaffold_ref(aks, cam_t, params):
    feature, anchor_xyz, childs_xyz, scale_extend, opacity_decay = aks
    N, F = feature.shape
    K = childs_xyz.shape[1]
    ob = cam_t[None, :] - anchor_xyz
    ob = ob / jnp.linalg.norm(ob, axis=-1, keepdims=True)
    fea_ob = jnp.concatenate([feature, ob], axis=-1)

    def mlp(x, p):
        w1, b1, w2, b2 = p
        return jnp.maximum(x @ w1 + b1, 0.0) @ w2 + b2

    scales = jax.nn.sigmoid(mlp(feature, params["scales"])).reshape(N, K, 3)
    scales = (scales * scale_extend[:, None, :]).reshape(-1, 3)
    quats = mlp(feature, params["quats"]).reshape(-1, 4)
    pre = jnp.exp(mlp(feature, params["opacities"])).reshape(-1)
    odec = jnp.repeat(opacity_decay[:, None], K, axis=1).reshape(-1)
    eps = jnp.finfo(jnp.float32).eps
    opac = 1.0 - jnp.exp(-pre / jnp.maximum(odec, eps))
    col = jax.nn.sigmoid(mlp(fea_ob, params["colors"])).reshape(-1, 3)
    return {
        "means": childs_xyz.reshape(-1, 3),
        "scales": scales,
        "quats": quats,
        "opacities": opac,
        "sh0": ((col - 0.5) / SH_C0)[:, None, :],
        "shN": jnp.zeros((N * K, 0, 3), jnp.float32),
    }


# ---------------------------------------------------------------------------
# Deterministic parameter / input construction
# ---------------------------------------------------------------------------
def make_mlp_params(key, in_dim, hidden, out_dim):
    k1, k2, k3, k4 = jax.random.split(key, 4)
    s1 = 1.0 / jnp.sqrt(in_dim)
    s2 = 1.0 / jnp.sqrt(hidden)
    return (jax.random.uniform(k1, (in_dim, hidden), jnp.float32, -s1, s1),
            jax.random.uniform(k2, (1, hidden), jnp.float32, -s1, s1),
            jax.random.uniform(k3, (hidden, out_dim), jnp.float32, -s2, s2),
            jax.random.uniform(k4, (1, out_dim), jnp.float32, -s2, s2))


if __name__ == "__main__":
    # small, module-consistent shapes (N not a multiple of 8 -> exercises padding)
    N, K = 20, 4                 # anchors, children per anchor
    F = 32                       # anchor_feature_dim  -> in_dim = F + 3 = 35
    H = 32                       # hidden_dim

    key = jax.random.PRNGKey(0)
    keys = jax.random.split(key, 12)

    feature = jax.random.normal(keys[0], (N, F), jnp.float32)
    anchor_xyz = jax.random.normal(keys[1], (N, 3), jnp.float32)
    childs_xyz = jax.random.normal(keys[2], (N, K, 3), jnp.float32)
    scale_extend = jax.random.uniform(keys[3], (N, 3), jnp.float32, 0.1, 1.0)
    opacity_decay = jax.random.uniform(keys[4], (N,), jnp.float32, 0.5, 2.0)
    cam_t = jax.random.normal(keys[5], (3,), jnp.float32) * 3.0

    params = {
        "scales":    make_mlp_params(keys[6], F, H, 3 * K),       # skip_cam
        "quats":     make_mlp_params(keys[7], F, H, 4 * K),       # skip_cam
        "opacities": make_mlp_params(keys[8], F, H, 1 * K),       # skip_cam
        "colors":    make_mlp_params(keys[9], F + 3, H, 3 * K),   # uses cam view
    }

    aks = (feature, anchor_xyz, childs_xyz, scale_extend, opacity_decay)

    fwd = jax.jit(functools.partial(scaffold_forward, tile_n=1024))
    gs = jax.block_until_ready(fwd(aks, cam_t, params))
    ref = jax.block_until_ready(scaffold_ref(aks, cam_t, params))

    tols = {"opacities": (5e-3, 5e-4)}   # approx reciprocal on the EUP
    for name in ("means", "scales", "quats", "opacities", "sh0", "shN"):
        assert gs[name].shape == ref[name].shape, name
        if gs[name].size:
            rtol, atol = tols.get(name, (1e-3, 1e-4))
            assert jnp.allclose(gs[name], ref[name], rtol=rtol, atol=atol), name

    print("KERNEL_OK")
</pallas_src>

<mosaic_0001>
module attributes {stable_mosaic.version = 11 : i64} {
  func.func @scaffold_kernel(%arg0: i32, %arg1: memref<24x32xf32, #tpu.memory_space<vmem>>, %arg2: memref<24x8xf32, #tpu.memory_space<vmem>>, %arg3: memref<1x3xf32, #tpu.memory_space<vmem>>, %arg4: memref<32x128xf32, #tpu.memory_space<vmem>>, %arg5: memref<3x128xf32, #tpu.memory_space<vmem>>, %arg6: memref<1x128xf32, #tpu.memory_space<vmem>>, %arg7: memref<128x44xf32, #tpu.memory_space<vmem>>, %arg8: memref<1x44xf32, #tpu.memory_space<vmem>>, %arg9: memref<24x44xf32, #tpu.memory_space<vmem>>) attributes {dimension_semantics = [#tpu.dimension_semantics<parallel>], iteration_bounds = array<i64: 1>, scalar_prefetch = 0 : i64, scratch_operands = 0 : i64, tpu.core_type = #tpu.core_type<tc>, window_params = [{transform_indices = @transform_0, window_bounds = array<i64: 24, 32>}, {transform_indices = @transform_1, window_bounds = array<i64: 24, 8>}, {pipeline_mode = #tpu.pipeline_mode<synchronous>, transform_indices = @transform_2, window_bounds = array<i64: 1, 3>}, {pipeline_mode = #tpu.pipeline_mode<synchronous>, transform_indices = @transform_3, window_bounds = array<i64: 32, 128>}, {pipeline_mode = #tpu.pipeline_mode<synchronous>, transform_indices = @transform_4, window_bounds = array<i64: 3, 128>}, {pipeline_mode = #tpu.pipeline_mode<synchronous>, transform_indices = @transform_5, window_bounds = array<i64: 1, 128>}, {pipeline_mode = #tpu.pipeline_mode<synchronous>, transform_indices = @transform_6, window_bounds = array<i64: 128, 44>}, {pipeline_mode = #tpu.pipeline_mode<synchronous>, transform_indices = @transform_7, window_bounds = array<i64: 1, 44>}, {transform_indices = @transform_8, window_bounds = array<i64: 24, 44>}]} {
    %c0 = arith.constant 0 : index
    %c0_0 = arith.constant 0 : index
    %0 = vector.load %arg1[%c0, %c0_0] : memref<24x32xf32, #tpu.memory_space<vmem>>, vector<24x32xf32>
    %c0_1 = arith.constant 0 : index
    %c0_2 = arith.constant 0 : index
    %1 = vector.load %arg2[%c0_1, %c0_2] : memref<24x8xf32, #tpu.memory_space<vmem>>, vector<24x8xf32>
    %2 = vector.extract_strided_slice %1 {offsets = [0, 0], sizes = [24, 3], strides = [1, 1]} : vector<24x8xf32> to vector<24x3xf32>
    %3 = vector.extract_strided_slice %1 {offsets = [0, 3], sizes = [24, 3], strides = [1, 1]} : vector<24x8xf32> to vector<24x3xf32>
    %4 = vector.extract_strided_slice %1 {offsets = [0, 6], sizes = [24, 1], strides = [1, 1]} : vector<24x8xf32> to vector<24x1xf32>
    %c0_3 = arith.constant 0 : index
    %c0_4 = arith.constant 0 : index
    %5 = vector.load %arg3[%c0_3, %c0_4] : memref<1x3xf32, #tpu.memory_space<vmem>>, vector<1x3xf32>
    %6 = vector.broadcast %5 : vector<1x3xf32> to vector<24x3xf32>
    %7 = arith.subf %6, %2 : vector<24x3xf32>
    %8 = arith.mulf %7, %7 : vector<24x3xf32>
    %cst = arith.constant dense<0.000000e+00> : vector<24xf32>
    %9 = vector.multi_reduction <add>, %8, %cst [1] : vector<24x3xf32> to vector<24xf32>
    %10 = vector.shape_cast %9 : vector<24xf32> to vector<24x1xf32>
    %11 = math.rsqrt %10 : vector<24x1xf32>
    %12 = vector.broadcast %11 : vector<24x1xf32> to vector<24x3xf32>
    %13 = arith.mulf %7, %12 : vector<24x3xf32>
    %c0_5 = arith.constant 0 : index
    %c0_6 = arith.constant 0 : index
    %14 = vector.load %arg4[%c0_5, %c0_6] : memref<32x128xf32, #tpu.memory_space<vmem>>, vector<32x128xf32>
    %cst_7 = arith.constant dense<0.000000e+00> : vector<24x128xf32>
    %15 = tpu.matmul %0, %14, %cst_7 {dimension_numbers = #tpu.dot_dimension_numbers<[1], [0], [0], [1], [0, 0, 1, 1], [], []>} : vector<24x32xf32>, vector<32x128xf32>, vector<24x128xf32> -> vector<24x128xf32>
    %c0_8 = arith.constant 0 : index
    %c0_9 = arith.constant 0 : index
    %16 = vector.load %arg5[%c0_8, %c0_9] : memref<3x128xf32, #tpu.memory_space<vmem>>, vector<3x128xf32>
    %cst_10 = arith.constant dense<0.000000e+00> : vector<24x128xf32>
    %17 = tpu.matmul %13, %16, %cst_10 {dimension_numbers = #tpu.dot_dimension_numbers<[1], [0], [0], [1], [0, 0, 1, 1], [], []>} : vector<24x3xf32>, vector<3x128xf32>, vector<24x128xf32> -> vector<24x128xf32>
    %18 = arith.addf %15, %17 : vector<24x128xf32>
    %c0_11 = arith.constant 0 : index
    %c0_12 = arith.constant 0 : index
    %19 = vector.load %arg6[%c0_11, %c0_12] : memref<1x128xf32, #tpu.memory_space<vmem>>, vector<1x128xf32>
    %20 = vector.broadcast %19 : vector<1x128xf32> to vector<24x128xf32>
    %21 = arith.addf %18, %20 : vector<24x128xf32>
    %cst_13 = arith.constant 0.000000e+00 : f32
    %22 = vector.broadcast %cst_13 : f32 to vector<24x128xf32>
    %23 = arith.maximumf %21, %22 : vector<24x128xf32>
    %c0_14 = arith.constant 0 : index
    %c0_15 = arith.constant 0 : index
    %24 = vector.load %arg7[%c0_14, %c0_15] : memref<128x44xf32, #tpu.memory_space<vmem>>, vector<128x44xf32>
    %cst_16 = arith.constant dense<0.000000e+00> : vector<24x44xf32>
    %25 = tpu.matmul %23, %24, %cst_16 {dimension_numbers = #tpu.dot_dimension_numbers<[1], [0], [0], [1], [0, 0, 1, 1], [], []>} : vector<24x128xf32>, vector<128x44xf32>, vector<24x44xf32> -> vector<24x44xf32>
    %c0_17 = arith.constant 0 : index
    %c0_18 = arith.constant 0 : index
    %26 = vector.load %arg8[%c0_17, %c0_18] : memref<1x44xf32, #tpu.memory_space<vmem>>, vector<1x44xf32>
    %27 = vector.broadcast %26 : vector<1x44xf32> to vector<24x44xf32>
    %28 = arith.addf %25, %27 : vector<24x44xf32>
    %29 = vector.extract_strided_slice %28 {offsets = [0, 0], sizes = [24, 12], strides = [1, 1]} : vector<24x44xf32> to vector<24x12xf32>
    %30 = arith.negf %29 : vector<24x12xf32>
    %31 = math.exp %30 : vector<24x12xf32>
    %cst_19 = arith.constant 1.000000e+00 : f32
    %32 = vector.broadcast %cst_19 : f32 to vector<24x12xf32>
    %33 = arith.addf %32, %31 : vector<24x12xf32>
    %34 = arith.divf %32, %33 : vector<24x12xf32>
    %35 = tpu.concatenate %3, %3, %3, %3 in 1 : vector<24x3xf32>, vector<24x3xf32>, vector<24x3xf32>, vector<24x3xf32> -> vector<24x12xf32>
    %36 = arith.mulf %34, %35 : vector<24x12xf32>
    %37 = vector.extract_strided_slice %28 {offsets = [0, 12], sizes = [24, 16], strides = [1, 1]} : vector<24x44xf32> to vector<24x16xf32>
    %cst_20 = arith.constant 1.1920929E-7 : f32
    %38 = vector.broadcast %cst_20 : f32 to vector<24x1xf32>
    %39 = arith.maximumf %4, %38 : vector<24x1xf32>
    %40 = tpu.reciprocal %39 {approx = true} : vector<24x1xf32> -> vector<24x1xf32>
    %41 = vector.extract_strided_slice %28 {offsets = [0, 28], sizes = [24, 4], strides = [1, 1]} : vector<24x44xf32> to vector<24x4xf32>
    %42 = math.exp %41 : vector<24x4xf32>
    %cst_21 = arith.constant 0.000000e+00 : f32
    %43 = vector.broadcast %cst_21 : f32 to vector<24x4xf32>
    %44 = arith.subf %43, %42 : vector<24x4xf32>
    %45 = vector.broadcast %40 : vector<24x1xf32> to vector<24x4xf32>
    %46 = arith.mulf %44, %45 : vector<24x4xf32>
    %47 = math.exp %46 : vector<24x4xf32>
    %cst_22 = arith.constant 1.000000e+00 : f32
    %48 = vector.broadcast %cst_22 : f32 to vector<24x4xf32>
    %49 = arith.subf %48, %47 : vector<24x4xf32>
    %50 = vector.extract_strided_slice %28 {offsets = [0, 32], sizes = [24, 12], strides = [1, 1]} : vector<24x44xf32> to vector<24x12xf32>
    %51 = arith.negf %50 : vector<24x12xf32>
    %52 = math.exp %51 : vector<24x12xf32>
    %cst_23 = arith.constant 1.000000e+00 : f32
    %53 = vector.broadcast %cst_23 : f32 to vector<24x12xf32>
    %54 = arith.addf %53, %52 : vector<24x12xf32>
    %55 = arith.divf %53, %54 : vector<24x12xf32>
    %cst_24 = arith.constant 5.000000e-01 : f32
    %56 = vector.broadcast %cst_24 : f32 to vector<24x12xf32>
    %57 = arith.subf %55, %56 : vector<24x12xf32>
    %cst_25 = arith.constant 3.54490781 : f32
    %58 = vector.broadcast %cst_25 : f32 to vector<24x12xf32>
    %59 = arith.mulf %57, %58 : vector<24x12xf32>
    %60 = tpu.concatenate %36, %37, %49, %59 in 1 : vector<24x12xf32>, vector<24x16xf32>, vector<24x4xf32>, vector<24x12xf32> -> vector<24x44xf32>
    %c0_26 = arith.constant 0 : index
    %c0_27 = arith.constant 0 : index
    %61 = vector.load %arg9[%c0_26, %c0_27] : memref<24x44xf32, #tpu.memory_space<vmem>>, vector<24x44xf32>
    tpu.vector_store %arg9[%c0_26, %c0_27], %60 {strides = array<i32>} : memref<24x44xf32, #tpu.memory_space<vmem>>, vector<24x44xf32>,
    return
  }
  func.func @transform_0(%arg0: i32) -> (i32, i32) {
    %c0_i32 = arith.constant 0 : i32
    %c0_i32_0 = arith.constant 0 : i32
    return %arg0, %c0_i32 : i32, i32
  }
  func.func @transform_1(%arg0: i32) -> (i32, i32) {
    %c0_i32 = arith.constant 0 : i32
    %c0_i32_0 = arith.constant 0 : i32
    return %arg0, %c0_i32 : i32, i32
  }
  func.func @transform_2(%arg0: i32) -> (i32, i32) {
    %c0_i32 = arith.constant 0 : i32
    %c0_i32_0 = arith.constant 0 : i32
    %c0_i32_1 = arith.constant 0 : i32
    return %c0_i32, %c0_i32_0 : i32, i32
  }
  func.func @transform_3(%arg0: i32) -> (i32, i32) {
    %c0_i32 = arith.constant 0 : i32
    %c0_i32_0 = arith.constant 0 : i32
    %c0_i32_1 = arith.constant 0 : i32
    return %c0_i32, %c0_i32_0 : i32, i32
  }
  func.func @transform_4(%arg0: i32) -> (i32, i32) {
    %c0_i32 = arith.constant 0 : i32
    %c0_i32_0 = arith.constant 0 : i32
    %c0_i32_1 = arith.constant 0 : i32
    return %c0_i32, %c0_i32_0 : i32, i32
  }
  func.func @transform_5(%arg0: i32) -> (i32, i32) {
    %c0_i32 = arith.constant 0 : i32
    %c0_i32_0 = arith.constant 0 : i32
    %c0_i32_1 = arith.constant 0 : i32
    return %c0_i32, %c0_i32_0 : i32, i32
  }
  func.func @transform_6(%arg0: i32) -> (i32, i32) {
    %c0_i32 = arith.constant 0 : i32
    %c0_i32_0 = arith.constant 0 : i32
    %c0_i32_1 = arith.constant 0 : i32
    return %c0_i32, %c0_i32_0 : i32, i32
  }
  func.func @transform_7(%arg0: i32) -> (i32, i32) {
    %c0_i32 = arith.constant 0 : i32
    %c0_i32_0 = arith.constant 0 : i32
    %c0_i32_1 = arith.constant 0 : i32
    return %c0_i32, %c0_i32_0 : i32, i32
  }
  func.func @transform_8(%arg0: i32) -> (i32, i32) {
    %c0_i32 = arith.constant 0 : i32
    %c0_i32_0 = arith.constant 0 : i32
    return %arg0, %c0_i32 : i32, i32
  }
}

</mosaic_0001>

<bundles_post_ra>
// kernel: scaffold_forward.1
= control target key start
LH: loop header
LB: loop body
LE: loop exit
PB: predicated region body
PF: predicated region fallthrough
CT: control target
= control target key end

     0   :  { %vm48_vm0 = vcmask 23552   ;;  %vm78_vm1 = vcmask 1042432   ;;  %v656_v13 = vmov 0.0   ;;  %vm657_vm2 = vmmov 0   ;;  %s659_s9 = smov 6   ;;  %s660_s10 = smov 125   ;;  %s914_s1 = inlined_call_operand.vmem [shape: f32[24,8], index: 1, kind: input, shape index: {}]   ;;  %s915_s2 = inlined_call_operand.vmem [shape: f32[1,3], index: 2, kind: input, shape index: {}]   ;;  %s916_s4 = inlined_call_operand.vmem [shape: f32[3,128], index: 4, kind: input, shape index: {}]   ;;  %s917_s6 = inlined_call_operand.vmem [shape: f32[128,44], index: 6, kind: input, shape index: {}]   ;;  %s918_s3 = inlined_call_operand.vmem [shape: f32[32,128], index: 3, kind: input, shape index: {}]   ;;  %s919_s0 = inlined_call_operand.vmem [shape: f32[24,32], index: 0, kind: input, shape index: {}]   ;;  %s920_s5 = inlined_call_operand.vmem [shape: f32[1,128], index: 5, kind: input, shape index: {}]   ;;  %s921_s7 = inlined_call_operand.vmem [shape: f32[1,44], index: 7, kind: input, shape index: {}]   ;;  %s922_s8 = inlined_call_operand.vmem [shape: f32[24,44], index: 8, kind: output, shape index: {}]  }
   0x1   :  { %v710_v0 = vld [vmem:[%s914_s1] sm:$0xff]  ;;  %v718_v2 = vld [vmem:[%s914_s1 + $0x8] sm:$0xff]  ;;  %v725_v5 = vld [vmem:[%s914_s1 + $0x10] sm:$0xff]  ;;  %543 = vmatprep.subr.mxu1 %v656_v13  ;;  %545 = vmatprep.mubr.msk.f32.mxu1 %vm657_vm2, %v656_v13  ;;  %vm162_vm3 = vcmask 261120   ;;  %v658_v52 = vmov 6   ;;  %vm419_vm4 = vcmask 48128  }
   0x2   :  { %v497_v1 = vld [vmem:[%s915_s2] ss:$0 sm:$0xff]  ;;  %571 = vmatprep.subr.mxu0 %v656_v13  ;;  %603 = vmatprep.mubr.msk.f32.mxu0 %vm657_vm2, %v656_v13  ;;  %v280_v15 = vld [vmem:[%s917_s6 + $0x78] sm:$0xff]  ;;  %v279_v16 = vld [vmem:[%s917_s6 + $0x70] sm:$0xff]  ;;  %v430_v42 = vmax.f32 %v710_v0, 1.1920929e-07  ;;  %v431_v43 = vmax.f32 %v718_v2, 1.1920929e-07 }
   0x3   :  { %v42_v3 = vsub.f32 %v497_v1, %v710_v0  ;;  %v43_v4 = vsub.f32 %v497_v1, %v718_v2  ;;  %v44_v6 = vsub.f32 %v497_v1, %v725_v5  ;;  %v68_v14 = vld [vmem:[%s916_s4] sm:$0x7]  ;;  %572 = vmatpush3.msra.mxu0 %v280_v15  ;;  %v278_v17 = vld [vmem:[%s917_s6 + $0x68] sm:$0xff]  ;;  %v276_v19 = vld [vmem:[%s917_s6 + $0x58] sm:$0xff]  ;;  %v432_v46 = vmax.f32 %v725_v5, 1.1920929e-07  ;;  %618 = vset.pattern.permute.xlu1 %v658_v52 }
   0x4   :  { %544 = vmatpush3.msk.msra.mxu1 %vm78_vm1, %v68_v14  ;;  %573 = vmatprep.subr.mxu0 %v656_v13  ;;  %v277_v18 = vld [vmem:[%s917_s6 + $0x60] sm:$0xff]  ;;  %v275_v20 = vld [vmem:[%s917_s6 + $0x50] sm:$0xff]  ;;  %v67_v26 = vld [vmem:[%s918_s3 + $0x18] sm:$0xff]  ;;  %vm423_vm5 = vcmask 72704   ;;  %vm478_vm6 = vcmask 97280   ;;  %vm482_vm7 = vcmask 228352  }
   0x5   :  { %v45_v7 = vmul.f32 %v42_v3, %v42_v3  ;;  %v46_v8 = vmul.f32 %v43_v4, %v43_v4  ;;  %v47_v9 = vmul.f32 %v44_v6, %v44_v6  ;;  %554 = vmatprep.subr.mxu1 %v656_v13  ;;  %574 = vmatpush3.msra.mxu0 %v279_v16  ;;  %v66_v28 = vld [vmem:[%s918_s3 + $0x10] sm:$0xff]  ;;  %v65_v31 = vld [vmem:[%s918_s3 + $0x8] sm:$0xff]  ;;  %v64_v33 = vld [vmem:[%s918_s3] sm:$0xff]  ;;  %vm489_vm8 = vcmask 359424  }
   0x6   :  { %575 = vmatprep.subr.mxu0 %v656_v13  ;;  %v29_v34 = vld [vmem:[%s919_s0] sm:$0xff]  ;;  %v30_v35 = vld [vmem:[%s919_s0 + $0x8] sm:$0xff]  ;;  %v31_v36 = vld [vmem:[%s919_s0 + $0x10] sm:$0xff]  ;;  %619 = vset.pattern.permute.xlu0 %v658_v52 }
   0x7   :  { %v49_v10 = vsel %vm48_vm0, %v45_v7, 0.0  ;;  %v55_v11 = vsel %vm48_vm0, %v47_v9, 0.0  ;;  %v52_v12 = vsel %vm48_vm0, %v46_v8, 0.0  ;;  %576 = vmatpush3.msra.mxu0 %v278_v17  ;;  %v274_v37 = vld [vmem:[%s917_s6 + $0x48] sm:$0xff]  ;;  %v273_v38 = vld [vmem:[%s917_s6 + $0x40] sm:$0xff]  ;;  %v272_v39 = vld [vmem:[%s917_s6 + $0x38] sm:$0xff] }
   0x8   :  { %50 = vadd.xlane.f32.xlu0 %v49_v10  ;;  %56 = vadd.xlane.f32.xlu1 %v55_v11  ;;  %v271_v40 = vld [vmem:[%s917_s6 + $0x30] sm:$0xff]  ;;  %v270_v41 = vld [vmem:[%s917_s6 + $0x28] sm:$0xff]  ;;  %v269_v44 = vld [vmem:[%s917_s6 + $0x20] sm:$0xff] }
   0x9   :  { %577 = vmatprep.subr.mxu0 %v656_v13  ;;  %v268_v45 = vld [vmem:[%s917_s6 + $0x18] sm:$0xff]  ;;  %v267_v47 = vld [vmem:[%s917_s6 + $0x10] sm:$0xff]  ;;  %v266_v48 = vld [vmem:[%s917_s6 + $0x8] sm:$0xff] }
   0xa   :  { %578 = vmatpush3.msra.mxu0 %v277_v18  ;;  %v265_v49 = vld [vmem:[%s917_s6] sm:$0xff]  ;;  %s661_s6 = smov 3  }
   0xb   :  { %579 = vmatprep.subr.mxu0 %v656_v13  ;;  %v505_v61 = vld [vmem:[%s920_s5] ss:$0 sm:$0xff] }
   0xc   :  { %53 = vadd.xlane.f32.xlu0 %v52_v12  ;;  %580 = vmatpush3.msra.mxu0 %v276_v19  ;;  %v506_v19 = vld [vmem:[%s921_s7] ss:$0 sm:$0xff] }
   0xd   :  { %581 = vmatprep.subr.mxu0 %v656_v13 }
   0xe   :  { %582 = vmatpush3.msra.mxu0 %v275_v20 }
   0xf   :  { %583 = vmatprep.subr.mxu0 %v656_v13 }
  0x10   :  { %584 = vmatpush3.msra.mxu0 %v274_v37 }
  0x11   :  { %585 = vmatprep.subr.mxu0 %v656_v13 }
  0x12   :  { %586 = vmatpush3.msra.mxu0 %v273_v38 }
  0x13   :  { %587 = vmatprep.subr.mxu0 %v656_v13 }
  0x14   :  { %588 = vmatpush3.msra.mxu0 %v272_v39 }
  0x15   :  { %589 = vmatprep.subr.mxu0 %v656_v13 }
  0x16   :  { %590 = vmatpush3.msra.mxu0 %v271_v40 }
  0x17   :  { %591 = vmatprep.subr.mxu0 %v656_v13 }
  0x18   :  { %592 = vmatpush3.msra.mxu0 %v270_v41 }
  0x19   :  { %593 = vmatprep.subr.mxu0 %v656_v13 }
  0x1a   :  { %594 = vmatpush3.msra.mxu0 %v269_v44 }
  0x1b   :  { %595 = vmatprep.subr.mxu0 %v656_v13 }
  0x1c   :  { %596 = vmatpush3.msra.mxu0 %v268_v45 }
  0x1d   :  { %597 = vmatprep.subr.mxu0 %v656_v13 }
  0x1e   :  { %598 = vmatpush3.msra.mxu0 %v267_v47 }
  0x1f   :  { %599 = vmatprep.subr.mxu0 %v656_v13 }
  0x20   :  { %600 = vmatpush3.msra.mxu0 %v266_v48 }
  0x21   :  { %601 = vmatprep.subr.mxu0 %v656_v13 }
  0x22   :  { %602 = vmatpush3.msra.mxu0 %v265_v49 }
  0x91   :  { %v51_v21 = vpop.xlane.xlu0 %50  ;;  %v57_v22 = vpop.xlane.xlu1 %56 }
  0x92   :  { %620 = vrsqrt.f32 %v51_v21 }
  0x93   :  { %622 = vrsqrt.f32 %v57_v22 }
  0x95   :  { %v54_v23 = vpop.xlane.xlu0 %53 }
  0x96   :  { %624 = vrsqrt.f32 %v54_v23 }
  0x97   :  { %626 = vrcp.f32 %v430_v42 }
  0x98   :  { %628 = vrcp.f32 %v431_v43 }
  0x99   :  { %630 = vrcp.f32 %v432_v46 }
  0x9f   :  { %v621_v24 = vpop.eup %620 }
  0xa0   :  { %v61_v25 = vmul.f32 %v621_v24, %v42_v3  ;;  %v623_v27 = vpop.eup %622 }
  0xa1   :  { %v63_v32 = vmul.f32 %v623_v27, %v44_v6 }
  0xa2   :  { %546 = vmatmul.mubr.msk.f32.vlgmr.msra.gmra.mxu1 %vm48_vm0, %v61_v25 }
  0xa3   :  { %v625_v29 = vpop.eup %624  ;;  %555 = vmatpush3.msra.mxu1 %v67_v26  ;;  %548 = vmatprep.mubr.msk.f32.mxu1 %vm657_vm2, %v656_v13 }
  0xa4   :  { %556 = vmatprep.subr.mxu1 %v656_v13  ;;  %v62_v30 = vmul.f32 %v625_v29, %v43_v4  ;;  %v627_v50 = vpop.eup %626 }
  0xa5   :  { %557 = vmatpush3.msra.mxu1 %v66_v28  ;;  %v629_v51 = vpop.eup %628  ;;  %447 = vperm.xlu1 %618, %v627_v50  }
  0xa6   :  { %549 = vmatmul.mubr.msk.f32.gmra.mxu1 %vm48_vm0, %v62_v30  ;;  %558 = vmatprep.subr.mxu1 %v656_v13  ;;  %v631_v53 = vpop.eup %630 }
  0xa7   :  { %559 = vmatpush3.msra.mxu1 %v65_v31  ;;  %551 = vmatprep.mubr.msk.f32.mxu1 %vm657_vm2, %v656_v13 }
  0xa8   :  { %560 = vmatprep.subr.mxu1 %v656_v13  ;;  %452 = vperm.xlu0 %619, %v629_v51  }
  0xa9   :  { %561 = vmatpush3.msra.mxu1 %v64_v33  ;;  %457 = vperm.xlu1 %618, %v631_v53  }
  0xaa   :  { %552 = vmatmul.mubr.msk.f32.gmra.mxu1 %vm48_vm0, %v63_v32 }
  0xab   :  { %562 = vmatprep.mubr.msk.f32.mxu1 %vm657_vm2, %v656_v13 }
  0xac   :  { %409 = vrot.lane.b32.xlu0 %v718_v2, %s659_s9 }
  0xad   :  { %389 = vrot.lane.b32.xlu1 %v710_v0, %s660_s10 }
  0xae   :  { %563 = vmatmul.mubr.msk.f32.vlgmr.msra.gmra.mxu1 %vm162_vm3, %v29_v34 }
  0xaf   :  { %565 = vmatprep.mubr.msk.f32.mxu1 %vm657_vm2, %v656_v13 }
  0xb1   :  { %391 = vrot.lane.b32.xlu1 %v718_v2, %s660_s10 }
  0xb2   :  { %566 = vmatmul.mubr.msk.f32.gmra.mxu1 %vm162_vm3, %v30_v35 }
  0xb3   :  { %568 = vmatprep.mubr.msk.f32.mxu1 %vm657_vm2, %v656_v13 }
  0xb5   :  { %393 = vrot.lane.b32.xlu1 %v725_v5, %s660_s10 }
  0xb6   :  { %569 = vmatmul.mubr.msk.f32.gmra.mxu1 %vm162_vm3, %v31_v36 }
  0xb9   :  { %398 = vrot.lane.b32.xlu1 %v710_v0, %s661_s6 }
  0xbd   :  { %400 = vrot.lane.b32.xlu1 %v718_v2, %s661_s6 }
  0xc1   :  { %402 = vrot.lane.b32.xlu1 %v725_v5, %s661_s6 }
  0xc5   :  { %407 = vrot.lane.b32.xlu1 %v710_v0, %s659_s9 }
  0xc9   :  { %411 = vrot.lane.b32.xlu1 %v725_v5, %s659_s9 }
 0x120   :  { %v448_v16 = vpop.permute.xlu1 %447 }
 0x123   :  { %v453_v48 = vpop.permute.xlu0 %452 }
 0x124   :  { %v458_v17 = vpop.permute.xlu1 %457 }
 0x128   :  { %v390_v18 = vpop.permute.xlu1 %389 }
 0x12c   :  { %v392_v23 = vpop.permute.xlu1 %391 }
 0x130   :  { %v394_v31 = vpop.permute.xlu1 %393 }
 0x134   :  { %v399_v36 = vpop.permute.xlu1 %398 }
 0x138   :  { %v401_v41 = vpop.permute.xlu1 %400 }
 0x13c   :  { %v403_v53 = vpop.permute.xlu1 %402 }
 0x162   :  { %v148_v54 = vpop.f32.mrf.mxu1 }
 0x164   :  { %v547_v55 = vpop.f32.mrf.mxu1 }
 0x166   :  { %v153_v56 = vpop.f32.mrf.mxu1 }
 0x168   :  { %v550_v57 = vpop.f32.mrf.mxu1 }
 0x16a   :  { %v158_v58 = vpop.f32.mrf.mxu1 }
 0x16c   :  { %v553_v59 = vpop.f32.mrf.mxu1 }
 0x16e   :  { %v238_v60 = vpop.f32.mrf.mxu1 }
 0x16f   :  { %v239_v62 = vadd.f32 %v238_v60, %v148_v54  ;;  %v408_v60 = vpop.permute.xlu1 %407 }
 0x170   :  { %v564_v63 = vpop.f32.mrf.mxu1 }
 0x171   :  { %v259_v1 = vadd.f32 %v505_v61, %v239_v62  ;;  %v417_v62 = vsel %vm48_vm0, %v392_v23, %v718_v2 }
 0x172   :  { %v243_v3 = vpop.f32.mrf.mxu1 }
 0x173   :  { %v262_v4 = vmax.f32 %v259_v1, 0.0  ;;  %v244_v6 = vadd.f32 %v243_v3, %v153_v56  ;;  %v416_v56 = vsel %vm48_vm0, %v390_v18, %v710_v0  ;;  %v418_v1 = vsel %vm48_vm0, %v394_v31, %v725_v5 }
 0x174   :  { %v567_v7 = vpop.f32.mrf.mxu1  ;;  %v420_v59 = vsel %vm419_vm4, %v416_v56, %v399_v36  ;;  %v421_v0 = vsel %vm419_vm4, %v417_v62, %v401_v41 }
 0x175   :  { %v260_v8 = vadd.f32 %v505_v61, %v244_v6  ;;  %604 = vmatmul.mubr.f32.vlgmr.msra.gmra.mxu0 %v262_v4  ;;  %v424_v63 = vsel %vm423_vm5, %v420_v59, %v408_v60  ;;  %v410_v6 = vpop.permute.xlu0 %409 }
 0x176   :  { %v248_v9 = vpop.f32.mrf.mxu1  ;;  %606 = vmatprep.mubr.msk.f32.mxu0 %vm657_vm2, %v656_v13  ;;  %v425_v2 = vsel %vm423_vm5, %v421_v0, %v410_v6 }
 0x177   :  { %v263_v10 = vmax.f32 %v260_v8, 0.0  ;;  %v249_v11 = vadd.f32 %v248_v9, %v158_v58  ;;  %v422_v9 = vsel %vm419_vm4, %v418_v1, %v403_v53 }
 0x178   :  { %v570_v12 = vpop.f32.mrf.mxu1 }
 0x179   :  { %v261_v14 = vadd.f32 %v505_v61, %v249_v11  ;;  %607 = vmatmul.mubr.f32.gmra.mxu0 %v263_v10 }
 0x17a   :  { %609 = vmatprep.mubr.msk.f32.mxu0 %vm657_vm2, %v656_v13 }
 0x17b   :  { %v264_v15 = vmax.f32 %v261_v14, 0.0 }
 0x17d   :  { %610 = vmatmul.mubr.f32.gmra.mxu0 %v264_v15  ;;  %v412_v15 = vpop.permute.xlu1 %411 }
 0x235   :  { %v354_v20 = vpop.f32.mrf.mxu0 }
 0x236   :  { %v866_v21 = vadd.f32 %v506_v19, %v354_v20 }
 0x237   :  { %v605_v22 = vpop.f32.mrf.mxu0 }
 0x238   :  { %v507_v24 = vmul.f32 -1.442695, %v866_v21  ;;  %v436_v25 = vmul.f32 1.442695, %v866_v21  ;;  %v426_v22 = vsel %vm423_vm5, %v422_v9, %v412_v15 }
 0x239   :  { %v359_v26 = vpop.f32.mrf.mxu0 }
 0x23a   :  { %632 = vpow2.f32 %v507_v24  ;;  %v870_v13 = vadd.f32 %v506_v19, %v359_v26 }
 0x23b   :  { %634 = vpow2.f32 %v436_v25  ;;  %v608_v27 = vpop.f32.mrf.mxu0 }
 0x23c   :  { %v508_v28 = vmul.f32 -1.442695, %v870_v13  ;;  %v438_v29 = vmul.f32 1.442695, %v870_v13 }
 0x23d   :  { %v364_v30 = vpop.f32.mrf.mxu0 }
 0x23e   :  { %636 = vpow2.f32 %v508_v28  ;;  %v874_v32 = vadd.f32 %v506_v19, %v364_v30 }
 0x23f   :  { %638 = vpow2.f32 %v438_v29  ;;  %v611_v33 = vpop.f32.mrf.mxu0 }
 0x240   :  { %v509_v34 = vmul.f32 -1.442695, %v874_v32  ;;  %v440_v35 = vmul.f32 1.442695, %v874_v32 }
 0x242   :  { %640 = vpow2.f32 %v509_v34 }
 0x243   :  { %642 = vpow2.f32 %v440_v35 }
 0x247   :  { %v633_v37 = vpop.eup %632 }
 0x248   :  { %v635_v38 = vpop.eup %634  ;;  %v377_v39 = vadd.f32 1.0, %v633_v37 }
 0x249   :  { %v442_v40 = vsub.f32 0.0, %v635_v38 }
 0x24a   :  { %644 = vrcp.f32 %v377_v39 }
 0x24b   :  { %v637_v42 = vpop.eup %636  ;;  %v460_v43 = vmul.f32 %v448_v16, %v442_v40 }
 0x24c   :  { %v639_v44 = vpop.eup %638  ;;  %v378_v45 = vadd.f32 1.0, %v637_v42 }
 0x24d   :  { %v463_v46 = vmul.f32 1.442695, %v460_v43  ;;  %v443_v47 = vsub.f32 0.0, %v639_v44 }
 0x24e   :  { %646 = vrcp.f32 %v378_v45 }
 0x24f   :  { %v641_v49 = vpop.eup %640  ;;  %648 = vpow2.f32 %v463_v46  ;;  %v461_v50 = vmul.f32 %v453_v48, %v443_v47 }
 0x250   :  { %v643_v51 = vpop.eup %642  ;;  %v379_v52 = vadd.f32 1.0, %v641_v49 }
 0x251   :  { %v444_v54 = vsub.f32 0.0, %v643_v51  ;;  %v465_v55 = vmul.f32 1.442695, %v461_v50 }
 0x252   :  { %650 = vrcp.f32 %v379_v52 }
 0x253   :  { %v462_v57 = vmul.f32 %v458_v17, %v444_v54  ;;  %652 = vpow2.f32 %v465_v55 }
 0x255   :  { %v467_v58 = vmul.f32 1.442695, %v462_v57 }
 0x257   :  { %v645_v61 = vpop.eup %644  ;;  %654 = vpow2.f32 %v467_v58 }
 0x258   :  { %v427_v3 = vmul.f32 %v645_v61, %v424_v63  ;;  %v510_v4 = vadd.f32 -0.5, %v645_v61 }
 0x25a   :  { %v475_v11 = vmul.f32 3.5449078, %v510_v4  ;;  %v479_v12 = vsel %vm478_vm6, %v427_v3, %v866_v21 }
 0x25b   :  { %v647_v7 = vpop.eup %646 }
 0x25c   :  { %v649_v8 = vpop.eup %648  ;;  %v428_v5 = vmul.f32 %v647_v7, %v425_v2  ;;  %v511_v14 = vadd.f32 -0.5, %v647_v7 }
 0x25d   :  { %v469_v10 = vsub.f32 1.0, %v649_v8 }
 0x25e   :  { %v476_v23 = vmul.f32 3.5449078, %v511_v14  ;;  %v480_v21 = vsel %vm478_vm6, %v428_v5, %v870_v13 }
 0x25f   :  { %v651_v16 = vpop.eup %650  ;;  %v483_v17 = vsel %vm482_vm7, %v479_v12, %v469_v10 }
 0x260   :  { %v653_v18 = vpop.eup %652  ;;  %v486_v19 = vsel %vm162_vm3, %v483_v17, %v475_v11  ;;  %v429_v24 = vmul.f32 %v651_v16, %v426_v22  ;;  %v512_v25 = vadd.f32 -0.5, %v651_v16 }
 0x261   :  { %490 = vst.msk [vmem:[%s922_s8] sm:$0xff] %vm489_vm8, %v486_v19  ;;  %v470_v20 = vsub.f32 1.0, %v653_v18 }
 0x262   :  { %v477_v30 = vmul.f32 3.5449078, %v512_v25  ;;  %v481_v31 = vsel %vm478_vm6, %v429_v24, %v874_v32 }
 0x263   :  { %v484_v26 = vsel %vm482_vm7, %v480_v21, %v470_v20 }
 0x264   :  { %v655_v27 = vpop.eup %654  ;;  %v487_v28 = vsel %vm162_vm3, %v484_v26, %v476_v23 }
 0x265   :  { %491 = vst.msk [vmem:[%s922_s8 + $0x8] sm:$0xff] %vm489_vm8, %v487_v28  ;;  %v471_v29 = vsub.f32 1.0, %v655_v27 }
 0x267   :  { %v485_v33 = vsel %vm482_vm7, %v481_v31, %v471_v29 }
 0x268   :  { %v488_v13 = vsel %vm162_vm3, %v485_v33, %v477_v30 }
 0x269   :  { %492 = vst.msk [vmem:[%s922_s8 + $0x10] sm:$0xff] %vm489_vm8, %v488_v13 }

</bundles_post_ra>
